<compile_context>
chip_gen: v7x
topology: tpu7x:2x2x1
jax: 0.10.0
libtpu: 0.0.40
codegen_flags: <defaults>
</compile_context>

<pallas_src>
import jax
import jax.numpy as jnp
from jax.experimental import pallas as pl
from jax.experimental.pallas import tpu as pltpu

LANE = 128
WEIGHT_DTYPE = jnp.bfloat16   # review: bf16 weights everywhere (int8 v5e / fp8 v7x optional)
EMB_DTYPE = jnp.bfloat16      # review: cast embeddings once weights are bf16


# ------------------------------- kernels ---------------------------------------
def _matmul_bias_kernel(x_ref, w_ref, b_ref, o_ref):
    # logits = x @ W + b        (cross_attention path / single-embedding fallback)
    o_ref[...] = (jnp.dot(x_ref[...], w_ref[...],
                          preferred_element_type=jnp.float32)
                  + b_ref[...]).astype(o_ref.dtype)


def _avg_matmul_bias_kernel(e1_ref, e2_ref, w_ref, b_ref, o_ref):
    # logits = ((e1 + e2) / 2) @ Wc + bc     ('average' fusion + classifier)
    h = ((e1_ref[...].astype(jnp.float32) + e2_ref[...].astype(jnp.float32)) * 0.5
         ).astype(w_ref.dtype)
    o_ref[...] = (jnp.dot(h, w_ref[...], preferred_element_type=jnp.float32)
                  + b_ref[...]).astype(o_ref.dtype)


def _dual_matmul_bias_kernel(e1_ref, e2_ref, wa_ref, wb_ref, b_ref, o_ref):
    # logits = e1 @ Wa + e2 @ Wb + b         ('concat' fusion + classifier, pre-fused)
    acc = jnp.dot(e1_ref[...], wa_ref[...], preferred_element_type=jnp.float32)
    acc = acc + jnp.dot(e2_ref[...], wb_ref[...], preferred_element_type=jnp.float32)
    o_ref[...] = (acc + b_ref[...]).astype(o_ref.dtype)


def _fused_call(kernel, out_shape, *args):
    # Single dispatch, no grid: every operand is one whole-array VMEM block.
    # Working set ~0.6 MiB in bf16 -> fits scoped VMEM on v5e/v6e/v7x; per review,
    # no grid / double-buffering / Buffered(n) and no cross-TC split at B=8.
    return pl.pallas_call(
        kernel,
        out_shape=jax.ShapeDtypeStruct(out_shape, jnp.float32),
        in_specs=[pl.BlockSpec(memory_space=pltpu.MemorySpace.VMEM)] * len(args),
        out_specs=pl.BlockSpec(memory_space=pltpu.MemorySpace.VMEM),
    )(*args)


# --------------------- one-time parameter preparation --------------------------
def _pad_axis_to_multiple(x, multiple, axis):
    n = x.shape[axis]
    target = ((n + multiple - 1) // multiple) * multiple
    if target == n:
        return x
    widths = [(0, 0)] * x.ndim
    widths[axis] = (0, target - n)
    return jnp.pad(x, widths)


def prepare_head_params(fusion_method, fusion_params, cls_w, cls_b):
    """Fold fusion-module weights into the classifier ONCE (static weights).

    cls_w: (num_classes, D)  cls_b: (num_classes,)   -- PyTorch nn.Linear layout.
    Returns lane-padded, pre-transposed, bf16 kernel operands (bias stays f32).
    Folding is done in f32; only the final fused matrices are cast to bf16.
    """
    num_classes, D1 = cls_w.shape
    wc = _pad_axis_to_multiple(cls_w.T.astype(jnp.float32), LANE, axis=1)   # (D1, Cp)
    bc = _pad_axis_to_multiple(cls_b.astype(jnp.float32), LANE, axis=0)     # (Cp,)

    if fusion_method == "average":
        return {"method": "average", "num_classes": num_classes,
                "w": wc.astype(WEIGHT_DTYPE), "b": bc[None, :]}

    if fusion_method == "concat":
        w1 = fusion_params["fc_w"].astype(jnp.float32)          # (D1, D1+D2)
        b1 = fusion_params["fc_b"].astype(jnp.float32)          # (D1,)
        wa = w1[:, :D1].T @ wc                                   # (D1, Cp)
        wb = w1[:, D1:].T @ wc                                   # (D2, Cp)
        bf = b1 @ wc + bc                                        # (Cp,)
        return {"method": "concat", "num_classes": num_classes,
                "wa": wa.astype(WEIGHT_DTYPE), "wb": wb.astype(WEIGHT_DTYPE),
                "b": bf[None, :]}

    if fusion_method == "cross_attention":
        # Q/K branch (proj1, Wq, Wk) is exactly removable: kv length is 1, so the
        # per-head softmax is 1.0 and attention output == V, independent of emb1.
        # TODO(synk): only valid for kv_len == 1 and eval mode (attn dropout = 0).
        p2w = fusion_params["proj2_w"].T.astype(jnp.float32)            # (D2, D1)
        p2b = fusion_params["proj2_b"].astype(jnp.float32)              # (D1,)
        wv = fusion_params["in_proj_w"][2 * D1:3 * D1, :].T.astype(jnp.float32)
        bv = fusion_params["in_proj_b"][2 * D1:3 * D1].astype(jnp.float32)
        wo = fusion_params["out_proj_w"].T.astype(jnp.float32)          # (D1, D1)
        bo = fusion_params["out_proj_b"].astype(jnp.float32)            # (D1,)
        w_fused = p2w @ (wv @ (wo @ wc))                                # (D2, Cp)
        b_fused = ((p2b @ wv + bv) @ wo + bo) @ wc + bc                 # (Cp,)
        return {"method": "cross_attention", "num_classes": num_classes,
                "w": w_fused.astype(WEIGHT_DTYPE), "b": b_fused[None, :]}

    raise ValueError(f"Unknown fusion method: {fusion_method}")


def prepare_classifier_only(cls_w, cls_b):
    num_classes = cls_w.shape[0]
    wc = _pad_axis_to_multiple(cls_w.T.astype(jnp.float32), LANE, axis=1)
    bc = _pad_axis_to_multiple(cls_b.astype(jnp.float32), LANE, axis=0)
    return {"num_classes": num_classes,
            "w": wc.astype(WEIGHT_DTYPE), "b": bc[None, :]}


# ------------------------------ forward builders --------------------------------
def build_fused_forward(prep):
    """fusion(emb1, emb2) + fc  ->  lane-padded logits (B, 128), one pallas_call.

    Padded columns are exactly zero; the consumer slices/argmaxes [:, :num_classes].
    """
    method = prep["method"]

    if method == "average":
        w, b = prep["w"], prep["b"]

        def fwd(e1, e2):
            return _fused_call(_avg_matmul_bias_kernel,
                               (e1.shape[0], w.shape[-1]),
                               e1.astype(EMB_DTYPE), e2.astype(EMB_DTYPE), w, b)

    elif method == "concat":
        wa, wb, b = prep["wa"], prep["wb"], prep["b"]

        def fwd(e1, e2):
            return _fused_call(_dual_matmul_bias_kernel,
                               (e1.shape[0], wa.shape[-1]),
                               e1.astype(EMB_DTYPE), e2.astype(EMB_DTYPE),
                               wa, wb, b)

    else:  # cross_attention — result is independent of emb1 (length-1 key softmax)
        w, b = prep["w"], prep["b"]

        def fwd(e1, e2):
            del e1
            return _fused_call(_matmul_bias_kernel,
                               (e2.shape[0], w.shape[-1]),
                               e2.astype(EMB_DTYPE), w, b)

    return jax.jit(fwd)


def build_classifier_forward(prep):
    w, b = prep["w"], prep["b"]

    def fwd(x):
        return _fused_call(_matmul_bias_kernel, (x.shape[0], w.shape[-1]),
                           x.astype(EMB_DTYPE), w, b)

    return jax.jit(fwd)


def custom_imagebind_forward(embeddings, mode, fused_fwd, classify_fwd):
    # TODO(synk): the ImageBind backbone (self.imagebind) is an external
    # pretrained model with no definition in the spec; we consume its output
    # embedding dict directly.
    if mode == "image_text":
        return fused_fwd(embeddings["vision"], embeddings["text"])
    if mode == "image_audio":
        return fused_fwd(embeddings["vision"], embeddings["audio"])
    for key in ("vision", "text", "audio"):
        if key in embeddings:
            return classify_fwd(embeddings[key])
    raise ValueError("Unexpected output structure from ImageBind model")


# ------------------------------ pure-JAX references -----------------------------
def _ref_fusion(method, e1, e2, fp, num_heads=8):
    if method == "average":
        return (e1 + e2) / 2
    if method == "concat":
        return jnp.concatenate([e1, e2], axis=-1) @ fp["fc_w"].T + fp["fc_b"]
    # full multi-head cross-attention with seq_len(q) = seq_len(kv) = 1
    D1 = e1.shape[-1]
    dh = D1 // num_heads
    x1 = e1 @ fp["proj1_w"].T + fp["proj1_b"]
    x2 = e2 @ fp["proj2_w"].T + fp["proj2_b"]
    q = x1 @ fp["in_proj_w"][:D1].T + fp["in_proj_b"][:D1]
    k = x2 @ fp["in_proj_w"][D1:2 * D1].T + fp["in_proj_b"][D1:2 * D1]
    v = x2 @ fp["in_proj_w"][2 * D1:].T + fp["in_proj_b"][2 * D1:]
    qh = q.reshape(-1, num_heads, dh) / jnp.sqrt(dh)
    kh = k.reshape(-1, num_heads, dh)
    vh = v.reshape(-1, num_heads, dh)
    scores = jnp.sum(qh * kh, axis=-1, keepdims=True)          # (B, H, 1): one key
    attn_w = jax.nn.softmax(scores, axis=-1)                   # identically 1.0
    attn = (attn_w * vh).reshape(-1, D1)
    return attn @ fp["out_proj_w"].T + fp["out_proj_b"]


def _ref_model(method, e1, e2, fp, cls_w, cls_b):
    return _ref_fusion(method, e1, e2, fp) @ cls_w.T + cls_b


# ------------------------------------ main ---------------------------------------
if __name__ == "__main__":
    B, D, NUM_CLASSES = 8, 1024, 10        # module hard-codes embedding_dim = 1024
    scale = 0.03
    key = jax.random.PRNGKey(0)
    ks = jax.random.split(key, 16)

    # Stand-in ImageBind output embeddings.
    vision = jax.random.normal(ks[0], (B, D), jnp.float32)
    text = jax.random.normal(ks[1], (B, D), jnp.float32)
    embeddings = {"vision": vision, "text": text}

    # Classifier  nn.Linear(1024, num_classes)
    cls_w = scale * jax.random.normal(ks[2], (NUM_CLASSES, D), jnp.float32)
    cls_b = scale * jax.random.normal(ks[3], (NUM_CLASSES,), jnp.float32)

    # 'concat' fusion params  nn.Linear(2 * 1024, 1024)
    concat_params = {
        "fc_w": scale * jax.random.normal(ks[4], (D, 2 * D), jnp.float32),
        "fc_b": scale * jax.random.normal(ks[5], (D,), jnp.float32),
    }

    # 'cross_attention' fusion params (proj1/Q/K kept only for the reference check;
    # they provably do not affect the output).
    xattn_params = {
        "proj1_w": scale * jax.random.normal(ks[6], (D, D), jnp.float32),
        "proj1_b": scale * jax.random.normal(ks[7], (D,), jnp.float32),
        "proj2_w": scale * jax.random.normal(ks[8], (D, D), jnp.float32),
        "proj2_b": scale * jax.random.normal(ks[9], (D,), jnp.float32),
        "in_proj_w": scale * jax.random.normal(ks[10], (3 * D, D), jnp.float32),
        "in_proj_b": scale * jax.random.normal(ks[11], (3 * D,), jnp.float32),
        "out_proj_w": scale * jax.random.normal(ks[12], (D, D), jnp.float32),
        "out_proj_b": scale * jax.random.normal(ks[13], (D,), jnp.float32),
    }

    fusion_param_sets = {"average": {}, "concat": concat_params,
                         "cross_attention": xattn_params}

    # Classifier-only fallback path ('vision'/'text'/'audio' only modes).
    classify_fwd = build_classifier_forward(prepare_classifier_only(cls_w, cls_b))

    for method, fp in fusion_param_sets.items():
        prep = prepare_head_params(method, fp, cls_w, cls_b)   # hoisted, runs once
        fused_fwd = build_fused_forward(prep)
        padded = jax.block_until_ready(
            custom_imagebind_forward(embeddings, "image_text", fused_fwd, classify_fwd))
        assert padded.shape == (B, LANE), (method, padded.shape)
        # consumer-side slice over the first num_classes columns (padded cols are 0)
        logits = padded[:, :NUM_CLASSES]
        ref = _ref_model(method, vision, text, fp, cls_w, cls_b)
        # bf16 weights/embeddings + fold reassociation -> slightly looser tolerance
        assert jnp.allclose(logits, ref, atol=3e-2, rtol=3e-3), f"{method} mismatch"
        assert jnp.all(padded[:, NUM_CLASSES:] == 0.0), f"{method} padding not zero"

    # Fallback: single-modality path (vision only) -> classifier.
    padded_v = jax.block_until_ready(
        custom_imagebind_forward({"vision": vision}, "vision_only",
                                 fused_fwd, classify_fwd))
    logits_v = padded_v[:, :NUM_CLASSES]
    assert jnp.allclose(logits_v, vision @ cls_w.T + cls_b, atol=3e-2, rtol=3e-3), \
        "classifier-only mismatch"

    print("KERNEL_OK")
</pallas_src>

<mosaic_0001>
module attributes {stable_mosaic.version = 11 : i64} {
  func.func @_avg_matmul_bias_kernel(%arg0: memref<8x1024xbf16, #tpu.memory_space<vmem>>, %arg1: memref<8x1024xbf16, #tpu.memory_space<vmem>>, %arg2: memref<1024x128xbf16, #tpu.memory_space<vmem>>, %arg3: memref<1x128xf32, #tpu.memory_space<vmem>>, %arg4: memref<8x128xf32, #tpu.memory_space<vmem>>) attributes {dimension_semantics = [], scalar_prefetch = 0 : i64, scratch_operands = 0 : i64, tpu.core_type = #tpu.core_type<tc>} {
    %c0 = arith.constant 0 : index
    %c0_0 = arith.constant 0 : index
    %0 = vector.load %arg0[%c0, %c0_0] : memref<8x1024xbf16, #tpu.memory_space<vmem>>, vector<8x1024xbf16>
    %1 = arith.extf %0 : vector<8x1024xbf16> to vector<8x1024xf32>
    %c0_1 = arith.constant 0 : index
    %c0_2 = arith.constant 0 : index
    %2 = vector.load %arg1[%c0_1, %c0_2] : memref<8x1024xbf16, #tpu.memory_space<vmem>>, vector<8x1024xbf16>
    %3 = arith.extf %2 : vector<8x1024xbf16> to vector<8x1024xf32>
    %4 = arith.addf %1, %3 : vector<8x1024xf32>
    %cst = arith.constant 5.000000e-01 : f32
    %5 = vector.broadcast %cst : f32 to vector<8x1024xf32>
    %6 = arith.mulf %4, %5 : vector<8x1024xf32>
    %7 = arith.truncf %6 : vector<8x1024xf32> to vector<8x1024xbf16>
    %c0_3 = arith.constant 0 : index
    %c0_4 = arith.constant 0 : index
    %8 = vector.load %arg2[%c0_3, %c0_4] : memref<1024x128xbf16, #tpu.memory_space<vmem>>, vector<1024x128xbf16>
    %cst_5 = arith.constant dense<0.000000e+00> : vector<8x128xf32>
    %9 = tpu.matmul %7, %8, %cst_5 {dimension_numbers = #tpu.dot_dimension_numbers<[1], [0], [0], [1], [0, 0, 1, 1], [], []>} : vector<8x1024xbf16>, vector<1024x128xbf16>, vector<8x128xf32> -> vector<8x128xf32>
    %c0_6 = arith.constant 0 : index
    %c0_7 = arith.constant 0 : index
    %10 = vector.load %arg3[%c0_6, %c0_7] : memref<1x128xf32, #tpu.memory_space<vmem>>, vector<1x128xf32>
    %11 = vector.broadcast %10 : vector<1x128xf32> to vector<8x128xf32>
    %12 = arith.addf %9, %11 : vector<8x128xf32>
    %c0_8 = arith.constant 0 : index
    %c0_9 = arith.constant 0 : index
    %13 = vector.load %arg4[%c0_8, %c0_9] : memref<8x128xf32, #tpu.memory_space<vmem>>, vector<8x128xf32>
    tpu.vector_store %arg4[%c0_8, %c0_9], %12 {strides = array<i32>} : memref<8x128xf32, #tpu.memory_space<vmem>>, vector<8x128xf32>,
    return
  }
}

</mosaic_0001>

<bundles_post_ra>
// kernel: fwd.1
= control target key start
LH: loop header
LB: loop body
LE: loop exit
PB: predicated region body
PF: predicated region fallthrough
CT: control target
= control target key end

     0   :  { %9 = vsyncpa [#allocation3], 0  ;;  %s1125_s0 = inlined_call_operand.vmem [shape: bf16[8,1024], index: 0, kind: input, shape index: {}]   ;;  %s1126_s1 = inlined_call_operand.vmem [shape: bf16[8,1024], index: 1, kind: input, shape index: {}]   ;;  %s1127_s2 = inlined_call_operand.hbm [shape: bf16[1024,128], index: 2, kind: input, shape index: {}]   ;;  %s1128_s3 = inlined_call_operand.vmem [shape: f32[1,128], index: 3, kind: input, shape index: {}]   ;;  %s1129_s4 = inlined_call_operand.hbm [shape: f32[8,128], index: 4, kind: output, shape index: {}]  }
   0x1   :  { %10 = vsyncpa [#allocation4], 0  ;;  %s1045_s15 = smov [#allocation2]   ;;  %s997_s19 = scalar_lea.hbm %s1127_s2, 8192 }
   0x2   :  { %s20_s16 = sshll.u32 %s1045_s15, 4  ;;  %p998_p0 = scmp.ne.s32.totalorder %s1127_s2, %s997_s19  ;;  %s21_s16 = int_to_ptr.vmem [resolvable:$true] %s20_s16 }
   0x3   :  { %p1001_p1 = scmp.lt.u32.totalorder %s997_s19, %s1127_s2 }
   0x5   :  { %p1003_p2 = pnand %p1001_p1, %p998_p0 }
   0x7   :  { %1006 = shalt.err (!%p1003_p2)
}
   0x8   :  { %s1007_s24 = scalar_lea.vmem %s21_s16, 8192  ;;  %p1012_p4 = scmp.lt.s32.totalorder %s21_s16, %s21_s16 }
   0x9   :  { %p1008_p3 = scmp.ne.s32.totalorder %s21_s16, %s1007_s24  ;;  %p1013_p5 = scmp.lt.s32.totalorder %s1007_s24, %s1007_s24 }
   0xb   :  { %p1014_p6 = por %p1013_p5, %p1012_p4 }
   0xd   :  { %p1015_p7 = pnand %p1014_p6, %p1008_p3 }
   0xf   :  { %1018 = shalt.err (!%p1015_p7)
}
  0x10   :  { %s1046_s25 = smov 64   ;;  %s1047_s26 = smov 4  }
  0x11   :  { %26 = dma.hbm_to_vmem [thread:$0]  %s1127_s2, 8192, %s21_s16, [#allocation3], %s1046_s25, %s1046_s25, %s1047_s26  }
  0x12   :  { %1041 = dma.done.wait [#allocation3], 8192  }
  0x13   :  { %1042 = vsyncadd [#allocation3], 4294959104  ;;  %v933_v0 = vld [vmem:[#allocation2 + $0x40] sm:$0xff]   ;;  %v937_v4 = vld [vmem:[#allocation2 + $0x48] sm:$0xff]  }
  0x14   :  { %v934_v1 = vld [vmem:[#allocation2 + $0xc0] sm:$0xff]   ;;  %841 = vmatprep.subr.bf16.mxu0 %v933_v0  ;;  %v938_v5 = vld [vmem:[#allocation2 + $0xc8] sm:$0xff]   ;;  %v941_v8 = vld [vmem:[#allocation2 + $0x50] sm:$0xff]  }
  0x15   :  { %v935_v2 = vld [vmem:[#allocation2] sm:$0xff]   ;;  %863 = vmatprep.subr.bf16.mxu1 %v934_v1  ;;  %v939_v6 = vld [vmem:[#allocation2 + $0x8] sm:$0xff]   ;;  %v942_v9 = vld [vmem:[#allocation2 + $0xd0] sm:$0xff]  }
  0x16   :  { %v936_v3 = vld [vmem:[#allocation2 + $0x80] sm:$0xff]   ;;  %842 = vmatpush3.bf16.msra.mxu0 %v935_v2  ;;  %v940_v7 = vld [vmem:[#allocation2 + $0x88] sm:$0xff]   ;;  %v943_v10 = vld [vmem:[#allocation2 + $0x10] sm:$0xff]  }
  0x17   :  { %864 = vmatpush3.bf16.msra.mxu1 %v936_v3  ;;  %843 = vmatprep.subr.bf16.mxu0 %v937_v4  ;;  %v944_v11 = vld [vmem:[#allocation2 + $0x90] sm:$0xff]   ;;  %v945_v12 = vld [vmem:[#allocation2 + $0x58] sm:$0xff]   ;;  %v949_v16 = vld [vmem:[#allocation2 + $0x60] sm:$0xff]  }
  0x18   :  { %865 = vmatprep.subr.bf16.mxu1 %v938_v5  ;;  %v946_v13 = vld [vmem:[#allocation2 + $0xd8] sm:$0xff]   ;;  %v950_v17 = vld [vmem:[#allocation2 + $0xe0] sm:$0xff]   ;;  %v953_v20 = vld [vmem:[#allocation2 + $0x68] sm:$0xff]  }
  0x19   :  { %v947_v14 = vld [vmem:[#allocation2 + $0x18] sm:$0xff]   ;;  %v951_v18 = vld [vmem:[#allocation2 + $0x20] sm:$0xff]   ;;  %v954_v21 = vld [vmem:[#allocation2 + $0xe8] sm:$0xff]  }
  0x1a   :  { %844 = vmatpush3.bf16.msra.mxu0 %v939_v6  ;;  %v948_v15 = vld [vmem:[#allocation2 + $0x98] sm:$0xff]   ;;  %v952_v19 = vld [vmem:[#allocation2 + $0xa0] sm:$0xff]   ;;  %v955_v22 = vld [vmem:[#allocation2 + $0x28] sm:$0xff]  }
  0x1b   :  { %866 = vmatpush3.bf16.msra.mxu1 %v940_v7  ;;  %845 = vmatprep.subr.bf16.mxu0 %v941_v8  ;;  %v956_v23 = vld [vmem:[#allocation2 + $0xa8] sm:$0xff]   ;;  %v957_v24 = vld [vmem:[#allocation2 + $0x70] sm:$0xff]   ;;  %v961_v28 = vld [vmem:[#allocation2 + $0x78] sm:$0xff]  }
  0x1c   :  { %867 = vmatprep.subr.bf16.mxu1 %v942_v9  ;;  %v958_v25 = vld [vmem:[#allocation2 + $0xf0] sm:$0xff]   ;;  %v962_v29 = vld [vmem:[#allocation2 + $0xf8] sm:$0xff]   ;;  %v33_v32 = vld [vmem:[%s1125_s0] sm:$0xff] }
  0x1d   :  { %v959_v26 = vld [vmem:[#allocation2 + $0x30] sm:$0xff]   ;;  %v963_v30 = vld [vmem:[#allocation2 + $0x38] sm:$0xff]   ;;  %v45_v33 = vld [vmem:[%s1126_s1] sm:$0xff]  ;;  %v37_v35 = vunpack.c.l.bf16 %v33_v32  ;;  %v38_v36 = vunpack.c.h.bf16 %v33_v32 }
  0x1e   :  { %846 = vmatpush3.bf16.msra.mxu0 %v943_v10  ;;  %v960_v27 = vld [vmem:[#allocation2 + $0xb0] sm:$0xff]   ;;  %v964_v31 = vld [vmem:[#allocation2 + $0xb8] sm:$0xff]   ;;  %v34_v34 = vld [vmem:[%s1125_s0 + $0x8] sm:$0xff]  ;;  %v49_v37 = vunpack.c.l.bf16 %v45_v33  ;;  %v50_v38 = vunpack.c.h.bf16 %v45_v33 }
  0x1f   :  { %868 = vmatpush3.bf16.msra.mxu1 %v944_v11  ;;  %847 = vmatprep.subr.bf16.mxu0 %v945_v12  ;;  %v46_v39 = vld [vmem:[%s1126_s1 + $0x8] sm:$0xff]  ;;  %v39_v40 = vunpack.c.l.bf16 %v34_v34  ;;  %v40_v41 = vunpack.c.h.bf16 %v34_v34  ;;  %v965_v44 = vld [vmem:[#allocation2 + $0x140] sm:$0xff]   ;;  %v973_v0 = vld [vmem:[#allocation2 + $0x150] sm:$0xff]  }
  0x20   :  { %869 = vmatprep.subr.bf16.mxu1 %v946_v13  ;;  %v51_v42 = vunpack.c.l.bf16 %v46_v39  ;;  %v52_v43 = vunpack.c.h.bf16 %v46_v39  ;;  %v58_v45 = vadd.f32 %v50_v38, %v38_v36  ;;  %v57_v46 = vadd.f32 %v49_v37, %v37_v35  ;;  %v966_v47 = vld [vmem:[#allocation2 + $0x1c0] sm:$0xff]   ;;  %v969_v60 = vld [vmem:[#allocation2 + $0x148] sm:$0xff]   ;;  %v974_v1 = vld [vmem:[#allocation2 + $0x1d0] sm:$0xff]  }
  0x21   :  { %v967_v52 = vld [vmem:[#allocation2 + $0x100] sm:$0xff]   ;;  %v970_v61 = vld [vmem:[#allocation2 + $0x1c8] sm:$0xff]   ;;  %v975_v2 = vld [vmem:[#allocation2 + $0x110] sm:$0xff]  }
  0x22   :  { %848 = vmatpush3.bf16.msra.mxu0 %v947_v14  ;;  %v60_v48 = vadd.f32 %v52_v43, %v40_v41  ;;  %v59_v49 = vadd.f32 %v51_v42, %v39_v40  ;;  %v66_v50 = vmul.f32 0.5, %v58_v45  ;;  %v65_v51 = vmul.f32 0.5, %v57_v46  ;;  %v968_v57 = vld [vmem:[#allocation2 + $0x180] sm:$0xff]   ;;  %v971_v62 = vld [vmem:[#allocation2 + $0x108] sm:$0xff]   ;;  %v976_v3 = vld [vmem:[#allocation2 + $0x190] sm:$0xff]  }
  0x23   :  { %870 = vmatpush3.bf16.msra.mxu1 %v948_v15  ;;  %849 = vmatprep.subr.bf16.mxu0 %v949_v16  ;;  %v972_v63 = vld [vmem:[#allocation2 + $0x188] sm:$0xff]   ;;  %v977_v4 = vld [vmem:[#allocation2 + $0x158] sm:$0xff]   ;;  %v981_v8 = vld [vmem:[#allocation2 + $0x160] sm:$0xff]  }
  0x24   :  { %871 = vmatprep.subr.bf16.mxu1 %v950_v17  ;;  %v68_v53 = vmul.f32 0.5, %v60_v48  ;;  %v67_v54 = vmul.f32 0.5, %v59_v49  ;;  %v74_v55 = vpack.c.bf16 %v66_v50, %v66_v50  ;;  %v73_v56 = vpack.c.bf16 %v65_v51, %v65_v51  ;;  %v978_v5 = vld [vmem:[#allocation2 + $0x1d8] sm:$0xff]   ;;  %v982_v9 = vld [vmem:[#allocation2 + $0x1e0] sm:$0xff]   ;;  %v985_v12 = vld [vmem:[#allocation2 + $0x168] sm:$0xff]  }
  0x25   :  { %v979_v6 = vld [vmem:[#allocation2 + $0x118] sm:$0xff]   ;;  %v983_v10 = vld [vmem:[#allocation2 + $0x120] sm:$0xff]   ;;  %v986_v13 = vld [vmem:[#allocation2 + $0x1e8] sm:$0xff]  }
  0x26   :  { %850 = vmatpush3.bf16.msra.mxu0 %v951_v18  ;;  %v76_v58 = vpack.c.bf16 %v68_v53, %v68_v53  ;;  %v75_v59 = vpack.c.bf16 %v67_v54, %v67_v54  ;;  %632 = vmatprep.mubr.bf16.mxu0 %v74_v55  ;;  %v980_v7 = vld [vmem:[#allocation2 + $0x198] sm:$0xff]   ;;  %v984_v11 = vld [vmem:[#allocation2 + $0x1a0] sm:$0xff]   ;;  %v987_v14 = vld [vmem:[#allocation2 + $0x128] sm:$0xff]  }
  0x27   :  { %872 = vmatpush3.bf16.msra.mxu1 %v952_v19  ;;  %851 = vmatprep.subr.bf16.mxu0 %v953_v20  ;;  %v988_v15 = vld [vmem:[#allocation2 + $0x1a8] sm:$0xff]   ;;  %v989_v16 = vld [vmem:[#allocation2 + $0x170] sm:$0xff]   ;;  %v993_v20 = vld [vmem:[#allocation2 + $0x178] sm:$0xff]  }
  0x28   :  { %873 = vmatprep.subr.bf16.mxu1 %v954_v21  ;;  %672 = vmatprep.mubr.bf16.mxu1 %v76_v58  ;;  %v990_v17 = vld [vmem:[#allocation2 + $0x1f0] sm:$0xff]   ;;  %v994_v21 = vld [vmem:[#allocation2 + $0x1f8] sm:$0xff]   ;;  %v776_v50 = vld [vmem:[%s1128_s3] ss:$0 sm:$0xff]  ;;  %s1048_s3 = smov [#allocation5]  }
  0x29   :  { %v991_v18 = vld [vmem:[#allocation2 + $0x130] sm:$0xff]   ;;  %v996_v33 = vld [vmem:[#allocation2 + $0x1b8] sm:$0xff]   ;;  %s767_s18 = sshll.u32 %s1048_s3, 4  ;;  %s768_s18 = int_to_ptr.vmem [resolvable:$true] %s767_s18 }
  0x2a   :  { %852 = vmatpush3.bf16.msra.mxu0 %v955_v22  ;;  %v992_v19 = vld [vmem:[#allocation2 + $0x1b0] sm:$0xff]   ;;  %s1019_s19 = scalar_lea.vmem %s768_s18, 128  ;;  %p1024_p9 = scmp.lt.s32.totalorder %s768_s18, %s768_s18 }
  0x2b   :  { %874 = vmatpush3.bf16.msra.mxu1 %v956_v23  ;;  %853 = vmatprep.subr.bf16.mxu0 %v957_v24  ;;  %v35_v22 = vld [vmem:[%s1125_s0 + $0x10] sm:$0xff]  ;;  %p1020_p8 = scmp.ne.s32.totalorder %s768_s18, %s1019_s19  ;;  %p1025_p10 = scmp.lt.s32.totalorder %s1019_s19, %s1019_s19 }
  0x2c   :  { %875 = vmatprep.subr.bf16.mxu1 %v958_v25  ;;  %v41_v23 = vunpack.c.l.bf16 %v35_v22  ;;  %v42_v24 = vunpack.c.h.bf16 %v35_v22  ;;  %v47_v25 = vld [vmem:[%s1126_s1 + $0x10] sm:$0xff] }
  0x2d   :  { %p1026_p11 = por %p1025_p10, %p1024_p9 }
  0x2e   :  { %854 = vmatpush3.bf16.msra.mxu0 %v959_v26  ;;  %v36_v26 = vld [vmem:[%s1125_s0 + $0x18] sm:$0xff] }
  0x2f   :  { %876 = vmatpush3.bf16.msra.mxu1 %v960_v27  ;;  %855 = vmatprep.subr.bf16.mxu0 %v961_v28  ;;  %v48_v27 = vld [vmem:[%s1126_s1 + $0x18] sm:$0xff]  ;;  %v44_v32 = vunpack.c.h.bf16 %v36_v26  ;;  %p1027_p12 = pnand %p1026_p11, %p1020_p8 }
  0x30   :  { %877 = vmatprep.subr.bf16.mxu1 %v962_v29  ;;  %v995_v28 = vld [vmem:[#allocation2 + $0x138] sm:$0xff]   ;;  %v53_v29 = vunpack.c.l.bf16 %v47_v25  ;;  %v55_v34 = vunpack.c.l.bf16 %v48_v27  ;;  %v56_v35 = vunpack.c.h.bf16 %v48_v27 }
  0x32   :  { %856 = vmatpush3.bf16.msra.mxu0 %v963_v30  ;;  %v54_v30 = vunpack.c.h.bf16 %v47_v25  ;;  %v61_v37 = vadd.f32 %v53_v29, %v41_v23  ;;  %v64_v38 = vadd.f32 %v56_v35, %v44_v32 }
  0x33   :  { %878 = vmatpush3.bf16.msra.mxu1 %v964_v31  ;;  %885 = vmatprep.subr.bf16.mxu0 %v965_v44  ;;  %v43_v31 = vunpack.c.l.bf16 %v36_v26 }
  0x34   :  { %907 = vmatprep.subr.bf16.mxu1 %v966_v47  ;;  %v62_v36 = vadd.f32 %v54_v30, %v42_v24  ;;  %v69_v41 = vmul.f32 0.5, %v61_v37  ;;  %v72_v42 = vmul.f32 0.5, %v64_v38 }
  0x35   :  { %633 = vmatmul.mubr.bf16.vlgmr.msra.gmra.mrb[0].mxu0 %v73_v56  ;;  %v63_v39 = vadd.f32 %v55_v34, %v43_v31 }
  0x36   :  { %673 = vmatmul.mubr.bf16.vlgmr.msra.gmra.mrb[0].mxu1 %v75_v59  ;;  %886 = vmatpush3.bf16.msra.mxu0 %v967_v52  ;;  %v70_v40 = vmul.f32 0.5, %v62_v36  ;;  %v77_v45 = vpack.c.bf16 %v69_v41, %v69_v41  ;;  %v80_v46 = vpack.c.bf16 %v72_v42, %v72_v42 }
  0x37   :  { %908 = vmatpush3.bf16.msra.mxu1 %v968_v57  ;;  %887 = vmatprep.subr.bf16.mxu0 %v969_v60  ;;  %v71_v43 = vmul.f32 0.5, %v63_v39 }
  0x38   :  { %909 = vmatprep.subr.bf16.mxu1 %v970_v61  ;;  %v78_v44 = vpack.c.bf16 %v70_v40, %v70_v40  ;;  %752 = vmatprep.mubr.bf16.mxu1 %v80_v46 }
  0x39   :  { %v79_v47 = vpack.c.bf16 %v71_v43, %v71_v43 }
  0x3a   :  { %888 = vmatpush3.bf16.msra.mxu0 %v971_v62  ;;  %712 = vmatprep.mubr.bf16.mxu0 %v78_v44 }
  0x3b   :  { %910 = vmatpush3.bf16.msra.mxu1 %v972_v63  ;;  %889 = vmatprep.subr.bf16.mxu0 %v973_v0 }
  0x3c   :  { %911 = vmatprep.subr.bf16.mxu1 %v974_v1 }
  0x3e   :  { %890 = vmatpush3.bf16.msra.mxu0 %v975_v2 }
  0x3f   :  { %912 = vmatpush3.bf16.msra.mxu1 %v976_v3  ;;  %891 = vmatprep.subr.bf16.mxu0 %v977_v4 }
  0x40   :  { %913 = vmatprep.subr.bf16.mxu1 %v978_v5 }
  0x42   :  { %892 = vmatpush3.bf16.msra.mxu0 %v979_v6 }
  0x43   :  { %914 = vmatpush3.bf16.msra.mxu1 %v980_v7  ;;  %893 = vmatprep.subr.bf16.mxu0 %v981_v8 }
  0x44   :  { %915 = vmatprep.subr.bf16.mxu1 %v982_v9 }
  0x46   :  { %894 = vmatpush3.bf16.msra.mxu0 %v983_v10 }
  0x47   :  { %916 = vmatpush3.bf16.msra.mxu1 %v984_v11  ;;  %895 = vmatprep.subr.bf16.mxu0 %v985_v12 }
  0x48   :  { %917 = vmatprep.subr.bf16.mxu1 %v986_v13 }
  0x4a   :  { %896 = vmatpush3.bf16.msra.mxu0 %v987_v14 }
  0x4b   :  { %918 = vmatpush3.bf16.msra.mxu1 %v988_v15  ;;  %897 = vmatprep.subr.bf16.mxu0 %v989_v16 }
  0x4c   :  { %919 = vmatprep.subr.bf16.mxu1 %v990_v17 }
  0x4e   :  { %898 = vmatpush3.bf16.msra.mxu0 %v991_v18 }
  0x4f   :  { %920 = vmatpush3.bf16.msra.mxu1 %v992_v19  ;;  %899 = vmatprep.subr.bf16.mxu0 %v993_v20 }
  0x50   :  { %921 = vmatprep.subr.bf16.mxu1 %v994_v21 }
  0x52   :  { %900 = vmatpush3.bf16.msra.mxu0 %v995_v28 }
  0x53   :  { %922 = vmatpush3.bf16.msra.mxu1 %v996_v33 }
  0x55   :  { %713 = vmatmul.mubr.bf16.vlgmr.msra.gmra.mrb[4].mxu0 %v77_v45 }
  0x56   :  { %753 = vmatmul.mubr.bf16.vlgmr.msra.gmra.mrb[4].mxu1 %v79_v47 }
 0x108   :  { %v857_v48 = vpop.f32.mrb[0].mxu0 }
 0x109   :  { %v879_v49 = vpop.f32.mrb[0].mxu1  ;;  %v858_v51 = vpop.f32.mrb[1].mxu0 }
 0x10a   :  { %v859_v52 = vadd.f32 %v858_v51, %v857_v48  ;;  %v880_v53 = vpop.f32.mrb[1].mxu1  ;;  %v860_v54 = vpop.f32.mrb[2].mxu0 }
 0x10b   :  { %v881_v55 = vadd.f32 %v880_v53, %v879_v49  ;;  %v882_v56 = vpop.f32.mrb[2].mxu1  ;;  %v861_v57 = vpop.f32.mrb[3].mxu0 }
 0x10c   :  { %v635_v58 = vadd.f32 %v859_v52, %v776_v50  ;;  %v883_v59 = vpop.f32.mrb[3].mxu1 }
 0x10e   :  { %v675_v60 = vadd.f32 %v881_v55, %v635_v58 }
 0x128   :  { %v901_v61 = vpop.f32.mrb[4].mxu0 }
 0x129   :  { %v923_v62 = vpop.f32.mrb[4].mxu1  ;;  %v902_v63 = vpop.f32.mrb[5].mxu0 }
 0x12a   :  { %v903_v0 = vadd.f32 %v902_v63, %v901_v61  ;;  %v924_v1 = vpop.f32.mrb[5].mxu1  ;;  %v904_v2 = vpop.f32.mrb[6].mxu0 }
 0x12b   :  { %v925_v3 = vadd.f32 %v924_v1, %v923_v62  ;;  %v926_v4 = vpop.f32.mrb[6].mxu1  ;;  %v905_v5 = vpop.f32.mrb[7].mxu0 }
 0x12c   :  { %v715_v6 = vadd.f32 %v903_v0, %v675_v60  ;;  %v927_v7 = vpop.f32.mrb[7].mxu1 }
 0x12e   :  { %v755_v8 = vadd.f32 %v925_v3, %v715_v6 }
 0x130   :  { %760 = vst [vmem:[#allocation5] sm:$0xff] %v755_v8 }
 0x131   :  { %1030 = shalt.err (!%p1027_p12)
}
 0x132   :  { %s1031_s22 = scalar_lea.hbm %s1129_s4, 128 }
 0x133   :  { %p1032_p13 = scmp.ne.s32.totalorder %s1129_s4, %s1031_s22  ;;  %p1035_p0 = scmp.lt.u32.totalorder %s1031_s22, %s1129_s4 }
 0x135   :  { %p1037_p1 = pnand %p1035_p0, %p1032_p13 }
 0x137   :  { %1040 = shalt.err (!%p1037_p1)
}
 0x138   :  { %770 = dma.vmem_to_hbm [thread:$0]  %s768_s18, 128, %s1129_s4, [#allocation4]  }
 0x139   :  { %1043 = dma.done.wait [#allocation4], 128  }
 0x13a   :  { %1044 = vsyncadd [#allocation4], 4294967168 }
 0x13b   :  { %774 = vsyncpa [#allocation3], 1 }
 0x13c   :  { %775 = vsyncpa [#allocation4], 1 }

</bundles_post_ra>
